<compile_context>
chip_gen: v6e
topology: v6e:2x2x1
jax: 0.10.0
libtpu: 0.0.40
codegen_flags: <defaults>
</compile_context>

<pallas_src>
import functools
import math

import jax
import jax.numpy as jnp
import numpy as np
from jax.experimental import pallas as pl
from jax.experimental.pallas import tpu as pltpu

HEAD_COUNT = 4
MODEL_DIM = 16
DIM_PER_HEAD = MODEL_DIM // HEAD_COUNT


def mha_kernel(k_ref, v_ref, q_ref, wkvq_ref, bkvq_ref, wf_ref, bf_ref,
               out_ref, attn_ref, *, seq_len):
    L, D, H, Dh = seq_len, MODEL_DIM, HEAD_COUNT, DIM_PER_HEAD

    # ---- fused K/V/Q projections: one batched (3,L,D) x (3,D,D) MXU pass ----
    x = jnp.stack([k_ref[0], v_ref[0], q_ref[0]], axis=0)             # (3, L, D)
    proj = jnp.einsum('kld,kdf->klf', x, wkvq_ref[...],
                      preferred_element_type=jnp.float32) + bkvq_ref[...]
    key = proj[0]                                                      # (L, D)
    val = proj[1]
    qry = proj[2] * (1.0 / math.sqrt(Dh))                              # q / sqrt(dph)

    # head-major staging (H, L, Dh): static lane slices + leading-dim stack
    # (cheap layout plumbing; all matmuls below are batched over heads).
    def heads(t):
        return jnp.stack([t[:, h * Dh:(h + 1) * Dh] for h in range(H)], axis=0)

    qh, kh, vh = heads(qry), heads(key), heads(val)                    # (H, L, Dh)

    # scores = (Q K^T + K Q^T)/2 ;  K Q^T == (Q K^T)^T -> one batched MXU pass
    # per step plus an XLU transpose (idle slot) instead of a second matmul.
    s1 = jnp.einsum('hld,hmd->hlm', qh, kh,
                    preferred_element_type=jnp.float32)                # (H, L, L)
    scores = (s1 + jnp.swapaxes(s1, 1, 2)) * 0.5

    # softmax over keys (f32 elementwise; exp + approx reciprocal use the EUP)
    m = jnp.max(scores, axis=-1, keepdims=True)
    e = jnp.exp(scores - m)
    attn = e * pl.reciprocal(jnp.sum(e, axis=-1, keepdims=True), approx=True)

    # post-softmax symmetrization; single store of the whole (H,L,L) block
    attn = (attn + jnp.swapaxes(attn, 1, 2)) * 0.5
    attn_ref[0] = attn

    # context (dropout is identity at inference), unshape, final linear.
    # TODO(synk): training-mode dropout (p=0.1) not implemented in-kernel.
    ctx = jnp.einsum('hlm,hmd->hld', attn, vh,
                     preferred_element_type=jnp.float32)               # (H, L, Dh)
    ctx = jnp.concatenate([ctx[h] for h in range(H)], axis=-1)         # (L, D)
    out = jnp.dot(ctx, wf_ref[...], preferred_element_type=jnp.float32) + bf_ref[...]
    out_ref[0] = out


def multi_headed_attention(key, value, query, params):
    """key/value/query: [B, L, D];
    params: (wkvq [3,D,D], bkvq [3,1,D], wf [D,D], bf [1,D]), weights (in,out)."""
    B, L, D = query.shape
    wkvq, bkvq, wf, bf = params
    H = HEAD_COUNT

    seq_spec = pl.BlockSpec((1, L, D), lambda b: (b, 0, 0))
    # constant index_maps: weights/biases stay VMEM-resident across grid steps
    wkvq_spec = pl.BlockSpec((3, D, D), lambda b: (0, 0, 0))
    bkvq_spec = pl.BlockSpec((3, 1, D), lambda b: (0, 0, 0))
    wf_spec = pl.BlockSpec((D, D), lambda b: (0, 0))
    bf_spec = pl.BlockSpec((1, D), lambda b: (0, 0))

    kernel = functools.partial(mha_kernel, seq_len=L)

    out, attn = pl.pallas_call(
        kernel,
        out_shape=(
            jax.ShapeDtypeStruct((B, L, D), jnp.float32),
            jax.ShapeDtypeStruct((B, H, L, L), jnp.float32),
        ),
        grid_spec=pltpu.PrefetchScalarGridSpec(
            num_scalar_prefetch=0,
            grid=(B,),   # one batch element per step: >= 2 steps lets v7x's two
                         # TCs split the batch and gives the pipeline slack to
                         # hide the f32 attention writeback.
            in_specs=[seq_spec, seq_spec, seq_spec,
                      wkvq_spec, bkvq_spec, wf_spec, bf_spec],
            out_specs=(
                pl.BlockSpec((1, L, D), lambda b: (b, 0, 0)),
                pl.BlockSpec((1, H, L, L), lambda b: (b, 0, 0, 0)),
            ),
        ),
        compiler_params=pltpu.CompilerParams(
            dimension_semantics=("parallel",),
            vmem_limit_bytes=32 * 1024 * 1024,
        ),
    )(key, value, query, wkvq, bkvq, wf, bf)
    return out, attn


def init_params(rng_key):
    """Deterministic init matching nn.Linear default ranges; weights stored
    (in, out); K/V/Q weights pre-stacked (3,D,D) for the fused projection."""
    keys = jax.random.split(rng_key, 4)
    bound = 1.0 / math.sqrt(MODEL_DIM)

    def lin(k):
        kw, kb = jax.random.split(k)
        w = jax.random.uniform(kw, (MODEL_DIM, MODEL_DIM), jnp.float32, -bound, bound)
        b = jax.random.uniform(kb, (MODEL_DIM,), jnp.float32, -bound, bound)
        return w, b

    wk, bk = lin(keys[0])
    wv, bv = lin(keys[1])
    wq, bq = lin(keys[2])
    wf, bf = lin(keys[3])
    wkvq = jnp.stack([wk, wv, wq], axis=0)                       # (3, D, D)
    bkvq = jnp.stack([bk, bv, bq], axis=0).reshape(3, 1, MODEL_DIM)
    return wkvq, bkvq, wf, bf.reshape(1, MODEL_DIM)


def reference_numpy(key, value, query, params):
    """Pure numpy reference mirroring the PyTorch forward (eval mode, no mask)."""
    wkvq, bkvq, wf, bf = (np.asarray(p) for p in params)
    wk, wv, wq = wkvq[0], wkvq[1], wkvq[2]
    bk, bv, bq = bkvq[0, 0], bkvq[1, 0], bkvq[2, 0]
    bf = bf[0]
    key, value, query = np.asarray(key), np.asarray(value), np.asarray(query)
    B, L, D = query.shape
    H, Dh = HEAD_COUNT, DIM_PER_HEAD

    k = key @ wk + bk
    v = value @ wv + bv
    q = query @ wq + bq

    def shape(x):
        return x.reshape(B, L, H, Dh).transpose(0, 2, 1, 3)  # [B, H, L, Dh]

    k, v, q = shape(k), shape(v), shape(q)
    q = q / math.sqrt(Dh)
    s1 = np.einsum('bhqd,bhkd->bhqk', q, k)
    s2 = np.einsum('bhkd,bhqd->bhkq', k, q)
    scores = (s1 + s2) / 2
    scores = scores - scores.max(-1, keepdims=True)
    e = np.exp(scores)
    attn = e / e.sum(-1, keepdims=True)
    attn = (attn + attn.transpose(0, 1, 3, 2)) / 2
    ctx = np.einsum('bhqk,bhkd->bhqd', attn, v)
    ctx = ctx.transpose(0, 2, 1, 3).reshape(B, L, D)
    out = ctx @ wf + bf
    return out, attn


if __name__ == "__main__":
    B, L, D = 2, 8, MODEL_DIM  # small shapes consistent with model_dim=16, head_count=4

    root = jax.random.PRNGKey(0)
    k_in, k_k, k_v, k_q = jax.random.split(root, 4)
    params = init_params(k_in)
    key = jax.random.normal(k_k, (B, L, D), jnp.float32)
    value = jax.random.normal(k_v, (B, L, D), jnp.float32)
    query = jax.random.normal(k_q, (B, L, D), jnp.float32)

    out, attn = multi_headed_attention(key, value, query, params)
    out, attn = jax.block_until_ready((out, attn))

    ref_out, ref_attn = reference_numpy(key, value, query, params)
    assert out.shape == (B, L, D) and attn.shape == (B, HEAD_COUNT, L, L)
    np.testing.assert_allclose(np.asarray(out), ref_out, rtol=5e-2, atol=5e-2)
    np.testing.assert_allclose(np.asarray(attn), ref_attn, rtol=5e-2, atol=5e-2)

    print("KERNEL_OK")
</pallas_src>

<mosaic_0001>
module attributes {stable_mosaic.version = 11 : i64} {
  func.func @mha_kernel(%arg0: i32, %arg1: memref<1x8x16xf32, #tpu.memory_space<vmem>>, %arg2: memref<1x8x16xf32, #tpu.memory_space<vmem>>, %arg3: memref<1x8x16xf32, #tpu.memory_space<vmem>>, %arg4: memref<3x16x16xf32, #tpu.memory_space<vmem>>, %arg5: memref<3x1x16xf32, #tpu.memory_space<vmem>>, %arg6: memref<16x16xf32, #tpu.memory_space<vmem>>, %arg7: memref<1x16xf32, #tpu.memory_space<vmem>>, %arg8: memref<1x8x16xf32, #tpu.memory_space<vmem>>, %arg9: memref<1x4x8x8xf32, #tpu.memory_space<vmem>>) attributes {dimension_semantics = [#tpu.dimension_semantics<parallel>], iteration_bounds = array<i64: 2>, scalar_prefetch = 0 : i64, scratch_operands = 0 : i64, tpu.core_type = #tpu.core_type<tc>, window_params = [{transform_indices = @transform_0, window_bounds = array<i64: 1, 8, 16>}, {transform_indices = @transform_1, window_bounds = array<i64: 1, 8, 16>}, {transform_indices = @transform_2, window_bounds = array<i64: 1, 8, 16>}, {pipeline_mode = #tpu.pipeline_mode<synchronous>, transform_indices = @transform_3, window_bounds = array<i64: 3, 16, 16>}, {pipeline_mode = #tpu.pipeline_mode<synchronous>, transform_indices = @transform_4, window_bounds = array<i64: 3, 1, 16>}, {pipeline_mode = #tpu.pipeline_mode<synchronous>, transform_indices = @transform_5, window_bounds = array<i64: 16, 16>}, {pipeline_mode = #tpu.pipeline_mode<synchronous>, transform_indices = @transform_6, window_bounds = array<i64: 1, 16>}, {transform_indices = @transform_7, window_bounds = array<i64: 1, 8, 16>}, {transform_indices = @transform_8, window_bounds = array<i64: 1, 4, 8, 8>}]} {
    %c0 = arith.constant 0 : index
    %c0_0 = arith.constant 0 : index
    %c0_1 = arith.constant 0 : index
    %0 = vector.load %arg1[%c0, %c0_0, %c0_1] : memref<1x8x16xf32, #tpu.memory_space<vmem>>, vector<1x8x16xf32>
    %1 = vector.shape_cast %0 : vector<1x8x16xf32> to vector<8x16xf32>
    %c0_2 = arith.constant 0 : index
    %c0_3 = arith.constant 0 : index
    %c0_4 = arith.constant 0 : index
    %2 = vector.load %arg2[%c0_2, %c0_3, %c0_4] : memref<1x8x16xf32, #tpu.memory_space<vmem>>, vector<1x8x16xf32>
    %3 = vector.shape_cast %2 : vector<1x8x16xf32> to vector<8x16xf32>
    %c0_5 = arith.constant 0 : index
    %c0_6 = arith.constant 0 : index
    %c0_7 = arith.constant 0 : index
    %4 = vector.load %arg3[%c0_5, %c0_6, %c0_7] : memref<1x8x16xf32, #tpu.memory_space<vmem>>, vector<1x8x16xf32>
    %5 = vector.shape_cast %4 : vector<1x8x16xf32> to vector<8x16xf32>
    %6 = vector.shape_cast %1 : vector<8x16xf32> to vector<1x8x16xf32>
    %7 = vector.shape_cast %3 : vector<8x16xf32> to vector<1x8x16xf32>
    %8 = vector.shape_cast %5 : vector<8x16xf32> to vector<1x8x16xf32>
    %9 = tpu.concatenate %6, %7, %8 in 0 : vector<1x8x16xf32>, vector<1x8x16xf32>, vector<1x8x16xf32> -> vector<3x8x16xf32>
    %c0_8 = arith.constant 0 : index
    %c0_9 = arith.constant 0 : index
    %c0_10 = arith.constant 0 : index
    %10 = vector.load %arg4[%c0_8, %c0_9, %c0_10] : memref<3x16x16xf32, #tpu.memory_space<vmem>>, vector<3x16x16xf32>
    "tpu.trace_start"() <{level = 10 : i32, message = "kld,kdf->klf"}> : () -> ()
    %cst = arith.constant dense<0.000000e+00> : vector<3x8x16xf32>
    %11 = tpu.matmul %9, %10, %cst {dimension_numbers = #tpu.dot_dimension_numbers<[2], [1], [1], [2], [0, 0, 0, 1, 1, 2], [0], [0]>} : vector<3x8x16xf32>, vector<3x16x16xf32>, vector<3x8x16xf32> -> vector<3x8x16xf32>
    "tpu.trace_stop"() : () -> ()
    %c0_11 = arith.constant 0 : index
    %c0_12 = arith.constant 0 : index
    %c0_13 = arith.constant 0 : index
    %12 = vector.load %arg5[%c0_11, %c0_12, %c0_13] : memref<3x1x16xf32, #tpu.memory_space<vmem>>, vector<3x1x16xf32>
    %13 = vector.broadcast %12 : vector<3x1x16xf32> to vector<3x8x16xf32>
    %14 = arith.addf %11, %13 : vector<3x8x16xf32>
    %15 = vector.extract_strided_slice %14 {offsets = [0, 0, 0], sizes = [1, 8, 16], strides = [1, 1, 1]} : vector<3x8x16xf32> to vector<1x8x16xf32>
    %16 = vector.shape_cast %15 : vector<1x8x16xf32> to vector<8x16xf32>
    %17 = vector.extract_strided_slice %14 {offsets = [1, 0, 0], sizes = [1, 8, 16], strides = [1, 1, 1]} : vector<3x8x16xf32> to vector<1x8x16xf32>
    %18 = vector.shape_cast %17 : vector<1x8x16xf32> to vector<8x16xf32>
    %19 = vector.extract_strided_slice %14 {offsets = [2, 0, 0], sizes = [1, 8, 16], strides = [1, 1, 1]} : vector<3x8x16xf32> to vector<1x8x16xf32>
    %20 = vector.shape_cast %19 : vector<1x8x16xf32> to vector<8x16xf32>
    %cst_14 = arith.constant 5.000000e-01 : f32
    %21 = vector.broadcast %cst_14 : f32 to vector<8x16xf32>
    %22 = arith.mulf %20, %21 : vector<8x16xf32>
    %23 = vector.extract_strided_slice %22 {offsets = [0, 0], sizes = [8, 4], strides = [1, 1]} : vector<8x16xf32> to vector<8x4xf32>
    %24 = vector.extract_strided_slice %22 {offsets = [0, 4], sizes = [8, 4], strides = [1, 1]} : vector<8x16xf32> to vector<8x4xf32>
    %25 = vector.extract_strided_slice %22 {offsets = [0, 8], sizes = [8, 4], strides = [1, 1]} : vector<8x16xf32> to vector<8x4xf32>
    %26 = vector.extract_strided_slice %22 {offsets = [0, 12], sizes = [8, 4], strides = [1, 1]} : vector<8x16xf32> to vector<8x4xf32>
    %27 = vector.shape_cast %23 : vector<8x4xf32> to vector<1x8x4xf32>
    %28 = vector.shape_cast %24 : vector<8x4xf32> to vector<1x8x4xf32>
    %29 = vector.shape_cast %25 : vector<8x4xf32> to vector<1x8x4xf32>
    %30 = vector.shape_cast %26 : vector<8x4xf32> to vector<1x8x4xf32>
    %31 = tpu.concatenate %27, %28, %29, %30 in 0 : vector<1x8x4xf32>, vector<1x8x4xf32>, vector<1x8x4xf32>, vector<1x8x4xf32> -> vector<4x8x4xf32>
    %32 = vector.extract_strided_slice %16 {offsets = [0, 0], sizes = [8, 4], strides = [1, 1]} : vector<8x16xf32> to vector<8x4xf32>
    %33 = vector.extract_strided_slice %16 {offsets = [0, 4], sizes = [8, 4], strides = [1, 1]} : vector<8x16xf32> to vector<8x4xf32>
    %34 = vector.extract_strided_slice %16 {offsets = [0, 8], sizes = [8, 4], strides = [1, 1]} : vector<8x16xf32> to vector<8x4xf32>
    %35 = vector.extract_strided_slice %16 {offsets = [0, 12], sizes = [8, 4], strides = [1, 1]} : vector<8x16xf32> to vector<8x4xf32>
    %36 = vector.shape_cast %32 : vector<8x4xf32> to vector<1x8x4xf32>
    %37 = vector.shape_cast %33 : vector<8x4xf32> to vector<1x8x4xf32>
    %38 = vector.shape_cast %34 : vector<8x4xf32> to vector<1x8x4xf32>
    %39 = vector.shape_cast %35 : vector<8x4xf32> to vector<1x8x4xf32>
    %40 = tpu.concatenate %36, %37, %38, %39 in 0 : vector<1x8x4xf32>, vector<1x8x4xf32>, vector<1x8x4xf32>, vector<1x8x4xf32> -> vector<4x8x4xf32>
    %41 = vector.extract_strided_slice %18 {offsets = [0, 0], sizes = [8, 4], strides = [1, 1]} : vector<8x16xf32> to vector<8x4xf32>
    %42 = vector.extract_strided_slice %18 {offsets = [0, 4], sizes = [8, 4], strides = [1, 1]} : vector<8x16xf32> to vector<8x4xf32>
    %43 = vector.extract_strided_slice %18 {offsets = [0, 8], sizes = [8, 4], strides = [1, 1]} : vector<8x16xf32> to vector<8x4xf32>
    %44 = vector.extract_strided_slice %18 {offsets = [0, 12], sizes = [8, 4], strides = [1, 1]} : vector<8x16xf32> to vector<8x4xf32>
    %45 = vector.shape_cast %41 : vector<8x4xf32> to vector<1x8x4xf32>
    %46 = vector.shape_cast %42 : vector<8x4xf32> to vector<1x8x4xf32>
    %47 = vector.shape_cast %43 : vector<8x4xf32> to vector<1x8x4xf32>
    %48 = vector.shape_cast %44 : vector<8x4xf32> to vector<1x8x4xf32>
    %49 = tpu.concatenate %45, %46, %47, %48 in 0 : vector<1x8x4xf32>, vector<1x8x4xf32>, vector<1x8x4xf32>, vector<1x8x4xf32> -> vector<4x8x4xf32>
    "tpu.trace_start"() <{level = 10 : i32, message = "hld,hmd->hlm"}> : () -> ()
    %cst_15 = arith.constant dense<0.000000e+00> : vector<4x8x8xf32>
    %50 = tpu.matmul %31, %40, %cst_15 {dimension_numbers = #tpu.dot_dimension_numbers<[2], [2], [1], [1], [0, 0, 0, 1, 1, 1], [0], [0]>} : vector<4x8x4xf32>, vector<4x8x4xf32>, vector<4x8x8xf32> -> vector<4x8x8xf32>
    "tpu.trace_stop"() : () -> ()
    %51 = tpu.transpose %50, [0, 2, 1] : vector<4x8x8xf32> -> vector<4x8x8xf32>
    %52 = arith.addf %50, %51 : vector<4x8x8xf32>
    %cst_16 = arith.constant 5.000000e-01 : f32
    %53 = vector.broadcast %cst_16 : f32 to vector<4x8x8xf32>
    %54 = arith.mulf %52, %53 : vector<4x8x8xf32>
    %cst_17 = arith.constant dense<0xFF800000> : vector<4x8xf32>
    %55 = vector.multi_reduction <maximumf>, %54, %cst_17 [2] : vector<4x8x8xf32> to vector<4x8xf32>
    %56 = vector.shape_cast %55 : vector<4x8xf32> to vector<4x8x1xf32>
    %57 = vector.broadcast %56 : vector<4x8x1xf32> to vector<4x8x8xf32>
    %58 = arith.subf %54, %57 : vector<4x8x8xf32>
    %59 = math.exp %58 : vector<4x8x8xf32>
    %cst_18 = arith.constant dense<0.000000e+00> : vector<4x8xf32>
    %60 = vector.multi_reduction <add>, %59, %cst_18 [2] : vector<4x8x8xf32> to vector<4x8xf32>
    %61 = vector.shape_cast %60 : vector<4x8xf32> to vector<4x8x1xf32>
    %62 = tpu.reciprocal %61 {approx = true} : vector<4x8x1xf32> -> vector<4x8x1xf32>
    %63 = vector.broadcast %62 : vector<4x8x1xf32> to vector<4x8x8xf32>
    %64 = arith.mulf %59, %63 : vector<4x8x8xf32>
    %65 = tpu.transpose %64, [0, 2, 1] : vector<4x8x8xf32> -> vector<4x8x8xf32>
    %66 = arith.addf %64, %65 : vector<4x8x8xf32>
    %cst_19 = arith.constant 5.000000e-01 : f32
    %67 = vector.broadcast %cst_19 : f32 to vector<4x8x8xf32>
    %68 = arith.mulf %66, %67 : vector<4x8x8xf32>
    %c0_20 = arith.constant 0 : index
    %c0_21 = arith.constant 0 : index
    %c0_22 = arith.constant 0 : index
    %c0_23 = arith.constant 0 : index
    %69 = vector.load %arg9[%c0_20, %c0_21, %c0_22, %c0_23] : memref<1x4x8x8xf32, #tpu.memory_space<vmem>>, vector<1x4x8x8xf32>
    %70 = vector.shape_cast %69 : vector<1x4x8x8xf32> to vector<4x8x8xf32>
    %71 = vector.shape_cast %68 : vector<4x8x8xf32> to vector<1x4x8x8xf32>
    tpu.vector_store %arg9[%c0_20, %c0_21, %c0_22, %c0_23], %71 {strides = array<i32>} : memref<1x4x8x8xf32, #tpu.memory_space<vmem>>, vector<1x4x8x8xf32>,
    "tpu.trace_start"() <{level = 10 : i32, message = "hlm,hmd->hld"}> : () -> ()
    %cst_24 = arith.constant dense<0.000000e+00> : vector<4x8x4xf32>
    %72 = tpu.matmul %68, %49, %cst_24 {dimension_numbers = #tpu.dot_dimension_numbers<[2], [1], [1], [2], [0, 0, 0, 1, 1, 2], [0], [0]>} : vector<4x8x8xf32>, vector<4x8x4xf32>, vector<4x8x4xf32> -> vector<4x8x4xf32>
    "tpu.trace_stop"() : () -> ()
    %73 = vector.extract_strided_slice %72 {offsets = [0, 0, 0], sizes = [1, 8, 4], strides = [1, 1, 1]} : vector<4x8x4xf32> to vector<1x8x4xf32>
    %74 = vector.shape_cast %73 : vector<1x8x4xf32> to vector<8x4xf32>
    %75 = vector.extract_strided_slice %72 {offsets = [1, 0, 0], sizes = [1, 8, 4], strides = [1, 1, 1]} : vector<4x8x4xf32> to vector<1x8x4xf32>
    %76 = vector.shape_cast %75 : vector<1x8x4xf32> to vector<8x4xf32>
    %77 = vector.extract_strided_slice %72 {offsets = [2, 0, 0], sizes = [1, 8, 4], strides = [1, 1, 1]} : vector<4x8x4xf32> to vector<1x8x4xf32>
    %78 = vector.shape_cast %77 : vector<1x8x4xf32> to vector<8x4xf32>
    %79 = vector.extract_strided_slice %72 {offsets = [3, 0, 0], sizes = [1, 8, 4], strides = [1, 1, 1]} : vector<4x8x4xf32> to vector<1x8x4xf32>
    %80 = vector.shape_cast %79 : vector<1x8x4xf32> to vector<8x4xf32>
    %81 = tpu.concatenate %74, %76, %78, %80 in 1 : vector<8x4xf32>, vector<8x4xf32>, vector<8x4xf32>, vector<8x4xf32> -> vector<8x16xf32>
    %c0_25 = arith.constant 0 : index
    %c0_26 = arith.constant 0 : index
    %82 = vector.load %arg6[%c0_25, %c0_26] : memref<16x16xf32, #tpu.memory_space<vmem>>, vector<16x16xf32>
    %cst_27 = arith.constant dense<0.000000e+00> : vector<8x16xf32>
    %83 = tpu.matmul %81, %82, %cst_27 {dimension_numbers = #tpu.dot_dimension_numbers<[1], [0], [0], [1], [0, 0, 1, 1], [], []>} : vector<8x16xf32>, vector<16x16xf32>, vector<8x16xf32> -> vector<8x16xf32>
    %c0_28 = arith.constant 0 : index
    %c0_29 = arith.constant 0 : index
    %84 = vector.load %arg7[%c0_28, %c0_29] : memref<1x16xf32, #tpu.memory_space<vmem>>, vector<1x16xf32>
    %85 = vector.broadcast %84 : vector<1x16xf32> to vector<8x16xf32>
    %86 = arith.addf %83, %85 : vector<8x16xf32>
    %c0_30 = arith.constant 0 : index
    %c0_31 = arith.constant 0 : index
    %c0_32 = arith.constant 0 : index
    %87 = vector.load %arg8[%c0_30, %c0_31, %c0_32] : memref<1x8x16xf32, #tpu.memory_space<vmem>>, vector<1x8x16xf32>
    %88 = vector.shape_cast %87 : vector<1x8x16xf32> to vector<8x16xf32>
    %89 = vector.shape_cast %86 : vector<8x16xf32> to vector<1x8x16xf32>
    tpu.vector_store %arg8[%c0_30, %c0_31, %c0_32], %89 {strides = array<i32>} : memref<1x8x16xf32, #tpu.memory_space<vmem>>, vector<1x8x16xf32>,
    return
  }
  func.func @transform_0(%arg0: i32) -> (i32, i32, i32) {
    %c0_i32 = arith.constant 0 : i32
    %c0_i32_0 = arith.constant 0 : i32
    %c0_i32_1 = arith.constant 0 : i32
    return %arg0, %c0_i32, %c0_i32_0 : i32, i32, i32
  }
  func.func @transform_1(%arg0: i32) -> (i32, i32, i32) {
    %c0_i32 = arith.constant 0 : i32
    %c0_i32_0 = arith.constant 0 : i32
    %c0_i32_1 = arith.constant 0 : i32
    return %arg0, %c0_i32, %c0_i32_0 : i32, i32, i32
  }
  func.func @transform_2(%arg0: i32) -> (i32, i32, i32) {
    %c0_i32 = arith.constant 0 : i32
    %c0_i32_0 = arith.constant 0 : i32
    %c0_i32_1 = arith.constant 0 : i32
    return %arg0, %c0_i32, %c0_i32_0 : i32, i32, i32
  }
  func.func @transform_3(%arg0: i32) -> (i32, i32, i32) {
    %c0_i32 = arith.constant 0 : i32
    %c0_i32_0 = arith.constant 0 : i32
    %c0_i32_1 = arith.constant 0 : i32
    %c0_i32_2 = arith.constant 0 : i32
    return %c0_i32, %c0_i32_0, %c0_i32_1 : i32, i32, i32
  }
  func.func @transform_4(%arg0: i32) -> (i32, i32, i32) {
    %c0_i32 = arith.constant 0 : i32
    %c0_i32_0 = arith.constant 0 : i32
    %c0_i32_1 = arith.constant 0 : i32
    %c0_i32_2 = arith.constant 0 : i32
    return %c0_i32, %c0_i32_0, %c0_i32_1 : i32, i32, i32
  }
  func.func @transform_5(%arg0: i32) -> (i32, i32) {
    %c0_i32 = arith.constant 0 : i32
    %c0_i32_0 = arith.constant 0 : i32
    %c0_i32_1 = arith.constant 0 : i32
    return %c0_i32, %c0_i32_0 : i32, i32
  }
  func.func @transform_6(%arg0: i32) -> (i32, i32) {
    %c0_i32 = arith.constant 0 : i32
    %c0_i32_0 = arith.constant 0 : i32
    %c0_i32_1 = arith.constant 0 : i32
    return %c0_i32, %c0_i32_0 : i32, i32
  }
  func.func @transform_7(%arg0: i32) -> (i32, i32, i32) {
    %c0_i32 = arith.constant 0 : i32
    %c0_i32_0 = arith.constant 0 : i32
    %c0_i32_1 = arith.constant 0 : i32
    return %arg0, %c0_i32, %c0_i32_0 : i32, i32, i32
  }
  func.func @transform_8(%arg0: i32) -> (i32, i32, i32, i32) {
    %c0_i32 = arith.constant 0 : i32
    %c0_i32_0 = arith.constant 0 : i32
    %c0_i32_1 = arith.constant 0 : i32
    %c0_i32_2 = arith.constant 0 : i32
    return %arg0, %c0_i32, %c0_i32_0, %c0_i32_1 : i32, i32, i32, i32
  }
}

</mosaic_0001>

<bundles_post_ra>
// kernel: tpu_custom_call.1
= control target key start
LH: loop header
LB: loop body
LE: loop exit
PB: predicated region body
PF: predicated region fallthrough
CT: control target
= control target key end

     0   :  { %s2862_s0 = inlined_call_operand.hbm [shape: f32[2,8,16], index: 0, kind: input, shape index: {}]   ;;  %s2863_s1 = inlined_call_operand.hbm [shape: f32[2,8,16], index: 1, kind: input, shape index: {}]   ;;  %s2864_s2 = inlined_call_operand.hbm [shape: f32[2,8,16], index: 2, kind: input, shape index: {}]   ;;  %s2865_s3 = inlined_call_operand.hbm [shape: f32[3,16,16], index: 3, kind: input, shape index: {}]   ;;  %s2866_s4 = inlined_call_operand.vmem [shape: f32[3,1,16], index: 4, kind: input, shape index: {}]   ;;  %s2867_s5 = inlined_call_operand.hbm [shape: f32[16,16], index: 5, kind: input, shape index: {}]   ;;  %s2868_s6 = inlined_call_operand.vmem [shape: f32[1,16], index: 6, kind: input, shape index: {}]   ;;  %s2869_s7 = inlined_call_operand.hbm [shape: f32[2,8,16], index: 7, kind: output, shape index: {0}]   ;;  %s2870_s8 = inlined_call_operand.hbm [shape: f32[2,4,8,8], index: 8, kind: output, shape index: {1}]  }
   0x1   :  { %2887 = sst [smem:[#allocation24_spill]] %s2862_s0 }
   0x2   :  { %2888 = sst [smem:[#allocation25_spill]] %s2865_s3 }
   0x3   :  { %2889 = sst [smem:[#allocation26_spill]] %s2869_s7 }
   0x4   :  { %14 = vsyncpa [#allocation3], 0 }
   0x5   :  { %16 = vsyncpa [#allocation3 + $0x1], 0 }
   0x6   :  { %17 = vsyncpa [#allocation6], 0 }
   0x7   :  { %19 = vsyncpa [#allocation6 + $0x1], 0 }
   0x8   :  { %20 = vsyncpa [#allocation9], 0 }
   0x9   :  { %21 = vsyncpa [#allocation4], 0 }
   0xa   :  { %23 = vsyncpa [#allocation4 + $0x1], 0 }
   0xb   :  { %24 = vsyncpa [#allocation13], 0 }
   0xc   :  { %26 = vsyncpa [#allocation13 + $0x1], 0  ;;  %s2470_s27 = smov 0   ;;  %s2472_s28 = smov 0  }
   0xd   :  { %s2474_s29 = smov 0   ;;  %s2476_s30 = smov 0  }
   0xe LB: > { %2890 = sst [smem:[#allocation19_spill]] %s2393_s27  ;;  %s2491_s9 = sadd.s32 4294967295, %s2405_s30   ;;  %s2405_s30 = sphi %s2476_s30, %s2920_s30   ;;  %s2401_s29 = sphi %s2474_s29, %s2924_s29   ;;  %s2397_s28 = sphi %s2472_s28, %s2923_s28   ;;  %s2393_s27 = sphi %s2470_s27, %s2922_s27  }
   0xf   : > { %2891 = sst [smem:[#allocation20_spill]] %s2405_s30  ;;  %s1915_s10 = sadd.s32 4294967294, %s2405_s30  }
  0x10   : > { %p52_p0 = scmp.ne.s32.totalorder %s2397_s28, %s2393_s27  ;;  %p2877_p1 = scmp.eq.s32.totalorder %s2491_s9, 0 }
  0x11   : > { %p212_p2 = scmp.eq.s32.totalorder %s2491_s9, 1  ;;  %p218_p3 = scmp.eq.s32.totalorder %s1915_s10, 1 }
  0x12   : > { %p2500_p4 = por %p2877_p1, %p52_p0  ;;  %p1916_p5 = scmp.ge.s32.totalorder %s2405_s30, 1 }
  0x13   : > { %p2505_p6 = por %p218_p3, %p52_p0  ;;  %p251_p7 = scmp.lt.s32.totalorder %s2405_s30, 3 }
  0x14   : > { %s2892_s11 = scalar_select %p2500_p4, 1, 0 }
  0x15   : > { %s2893_s12 = scalar_select %p2505_p6, 1, 0 }
  0x16   : > { %p2510_p8 = pnand %p1916_p5, %p251_p7  ;;  %s2407_s14 = smov [#allocation8]  }
  0x17   : > { %2894 = sst [smem:[#allocation21_spill]] %s2893_s12  ;;  %s263_s15 = sshll.u32 %s2407_s14, 4  ;;  %s264_s15 = int_to_ptr.vmem [resolvable:$true] %s263_s15 }
  0x18   : > { %s2895_s13 = scalar_select %p2510_p8, 1, 0 }
  0x19   : > { %p2076_p9 = pneg %p2510_p8  ;;  %s2524_s17 = sadd.s32 1, %s2405_s30  }
  0x1a   : > { %2897 = sst [smem:[#allocation22_spill]] %s2524_s17  ;;  %s39_s18 = sadd.s32 1, %s2401_s29 }
  0x1b   : > { %p2519_p11 = pnand %p2076_p9, %p2877_p1  ;;  %s36_s19 = ssub.s32 %s2405_s30, %s2524_s17 }
  0x1c   : > { %s2178_s20 = scalar_lea.vmem %s264_s15, 768  ;;  %p2186_p5 = scmp.lt.s32.totalorder %s264_s15, %s264_s15 }
  0x1d   : > { %s2896_s16 = scalar_select %p2519_p11, 1, 0 }
  0x1e   : > { %p2878_p12 = pneg %p2519_p11  ;;  %p2179_p13 = scmp.ne.s32.totalorder %s264_s15, %s2178_s20 }
  0x1f   : > { %p2187_p7 = scmp.lt.s32.totalorder %s2178_s20, %s2178_s20 }
  0x20   : > { %p2181_p0 = pnand %p2179_p13, %p2878_p12 }
  0x21   : > { %p2188_p9 = por %p2187_p7, %p2186_p5 }
  0x22   : > { %p2182_p3 = pneg %p2181_p0 }
  0x24   : > { %p2189_p10 = pnand %p2188_p9, %p2182_p3 }
  0x26   : > { %2192 = shalt.err (!%p2189_p10)
}
  0x27   : > { %s2871_s21 = smov 128   ;;  %s2872_s22 = smov 8  }
  0x28   : > { %s2898_s3 = sld [smem:[#allocation25_spill]]  ;;  %p37_p10 = scmp.eq.s32.totalorder %s36_s19, 0 }
  0x29   : > { %p46_p13 = scmp.ne.s32.totalorder %s2401_s29, %s2397_s28  ;;  %p47_p0 = scmp.eq.s32.totalorder %s2405_s30, 0 }
  0x2a   : > { %p2102_p3 = scmp.lt.s32.totalorder %s2405_s30, 2  ;;  %s2873_s10 = sand.u32 1, %s2401_s29  }
  0x2b   : > { %s2547_s25 = scalar_select %p37_p10, %s2401_s29, %s39_s18  }
  0x2c   : > { %p48_p5 = por %p47_p0, %p46_p13  ;;  %p2551_p7 = por %p212_p2, %p46_p13 }
  0x2d   : > { %2899 = sst [smem:[#allocation23_spill]] %s2547_s25  ;;  %s2557_s14 = sshll.u32 %s2405_s30, 7 }
  0x2e   : > { %2079 = dma.hbm_to_vmem [thread:$0]  (!%p2519_p11), %s2898_s3, 768, %s264_s15, [#allocation9], %s2871_s21, %s2871_s21, %s2872_s22  }
  0x2f   : > { %s2900_s26 = scalar_select %p2551_p7, 1, 0 }
  0x30   : > { %s2561_s20 = sshll.u32 %s2873_s10, 3  ;;  %p2563_p9 = pnand %p2102_p3, %p48_p5 }
  0x31   : > { %s314_s18 = sand.u32 1, %s2405_s30   ;;  %s2572_s24 = scalar_lea.hbm %s2863_s1, %s2557_s14 }
  0x32   : > { %s318_s21 = scalar_lea.vmem [#allocation5], %s2561_s20  ;;  %s2575_s10 = scalar_lea.sflag [#allocation6], %s314_s18 }
  0x33   : > { %s325_s22 = sshll.u32 %s318_s21, 4  ;;  %s2193_s3 = scalar_lea.hbm %s2572_s24, 128  ;;  %s326_s22 = int_to_ptr.vmem [resolvable:$true] %s325_s22 }
  0x34   : > { %p2194_p2 = scmp.ne.s32.totalorder %s2572_s24, %s2193_s3  ;;  %p2581_p10 = pneg %p2563_p9 }
  0x35   : > { %s2198_s17 = scalar_lea.hbm %s2863_s1, 256  ;;  %p2199_p3 = scmp.lt.s32.totalorder %s2572_s24, %s2863_s1 }
  0x36   : > { %p2196_p13 = pnand %p2581_p10, %p2194_p2  ;;  %p2200_p5 = scmp.lt.s32.totalorder %s2198_s17, %s2193_s3 }
  0x38   : > { %p2197_p0 = pneg %p2196_p13  ;;  %p2201_p1 = por %p2200_p5, %p2199_p3 }
  0x3a   : > { %p2202_p12 = pnand %p2201_p1, %p2197_p0 }
  0x3c   : > { %2205 = shalt.err (!%p2202_p12)
}
  0x3d   : > { %s2206_s18 = scalar_lea.vmem %s326_s22, 128  ;;  %s2410_s12 = smov [#allocation5]  }
  0x3e   : > { %p2207_p6 = scmp.ne.s32.totalorder %s326_s22, %s2206_s18  ;;  %s2211_s27 = sshll.u32 %s2410_s12, 4  ;;  %s2212_s27 = int_to_ptr.vmem [resolvable:$false] %s2211_s27 }
  0x3f   : > { %s2213_s7 = scalar_lea.vmem %s2212_s27, 256  ;;  %p2214_p2 = scmp.lt.s32.totalorder %s326_s22, %s2212_s27 }
  0x40   : > { %p2209_p7 = pnand %p2207_p6, %p2581_p10  ;;  %p2215_p13 = scmp.lt.s32.totalorder %s2213_s7, %s2206_s18 }
  0x42   : > { %p2210_p4 = pneg %p2209_p7  ;;  %p2216_p8 = por %p2215_p13, %p2214_p2 }
  0x44   : > { %p2217_p11 = pnand %p2216_p8, %p2210_p4 }
  0x46   : > { %2220 = shalt.err (!%p2217_p11)
}
  0x47   : > { %2089 = dma.hbm_to_vmem [thread:$0]  (!%p2563_p9), %s2572_s24, 128, %s326_s22, %s2575_s10  }
  0x48   : > { %s2411_s3 = smov [#allocation10]   ;;  %p2903_p6 = scmp.ne.s32.totalorder %s2896_s16, 0 }
  0x49   : > { %s279_s30 = sshll.u32 %s2411_s3, 4  ;;  %s280_s30 = int_to_ptr.vmem [resolvable:$true] %s279_s30 }
  0x4a   : > { %s2232_s17 = scalar_lea.vmem %s280_s30, 256  ;;  %p2904_p12 = pneg %p2903_p6 }
  0x4b   : > { %p2233_p1 = scmp.ne.s32.totalorder %s280_s30, %s2232_s17  ;;  %p2240_p3 = scmp.lt.s32.totalorder %s280_s30, %s280_s30 }
  0x4c   : > { %p2241_p5 = scmp.lt.s32.totalorder %s2232_s17, %s2232_s17 }
  0x4d   : > { %p2235_p7 = pnand %p2233_p1, %p2904_p12 }
  0x4e   : > { %p2242_p2 = por %p2241_p5, %p2240_p3 }
  0x4f   : > { %p2236_p0 = pneg %p2235_p7 }
  0x51   : > { %p2243_p4 = pnand %p2242_p2, %p2236_p0 }
  0x53   : > { %2246 = shalt.err (!%p2243_p4)
}
  0x54   : > { %s2905_s7 = smov 8   ;;  %s2906_s27 = smov 128  }
  0x55   : > { %2082 = dma.hbm_to_vmem [thread:$0]  (!%p2903_p6), %s2867_s5, 256, %s280_s30, [#allocation9], %s2906_s27, %s2906_s27, %s2905_s7  }
  0x56   : > { %s2907_s0 = sld [smem:[#allocation24_spill]]  ;;  %s300_s16 = scalar_lea.vmem [#allocation2], %s2561_s20 }
  0x57   : > { %s307_s21 = sshll.u32 %s300_s16, 4  ;;  %s2908_s18 = sand.u32 1, %s2401_s29   ;;  %s308_s21 = int_to_ptr.vmem [resolvable:$true] %s307_s21 }
  0x58   : > { %s297_s3 = scalar_lea.sflag [#allocation3], %s2908_s18 }
  0x5c   : > { %s2615_s23 = scalar_lea.hbm %s2907_s0, %s2557_s14  ;;  %s2252_s7 = scalar_lea.hbm %s2907_s0, 256 }
  0x5d   : > { %s2247_s17 = scalar_lea.hbm %s2615_s23, 128  ;;  %p2253_p1 = scmp.lt.s32.totalorder %s2615_s23, %s2907_s0 }
  0x5e   : > { %p2248_p8 = scmp.ne.s32.totalorder %s2615_s23, %s2247_s17  ;;  %p2254_p6 = scmp.lt.s32.totalorder %s2252_s7, %s2247_s17 }
  0x60   : > { %p2250_p11 = pnand %p2248_p8, %p2581_p10  ;;  %p2255_p12 = por %p2254_p6, %p2253_p1 }
  0x62   : > { %p2251_p13 = pneg %p2250_p11 }
  0x64   : > { %p2256_p7 = pnand %p2255_p12, %p2251_p13 }
  0x66   : > { %2259 = shalt.err (!%p2256_p7)
}
  0x67   : > { %s2260_s24 = scalar_lea.vmem %s308_s21, 128  ;;  %s2412_s19 = smov [#allocation2]  }
  0x68   : > { %p2261_p0 = scmp.ne.s32.totalorder %s308_s21, %s2260_s24  ;;  %s2265_s16 = sshll.u32 %s2412_s19, 4  ;;  %s2266_s16 = int_to_ptr.vmem [resolvable:$false] %s2265_s16 }
  0x69   : > { %s2267_s18 = scalar_lea.vmem %s2266_s16, 256  ;;  %p2268_p2 = scmp.lt.s32.totalorder %s308_s21, %s2266_s16 }
  0x6a   : > { %p2263_p3 = pnand %p2261_p0, %p2581_p10  ;;  %p2269_p4 = scmp.lt.s32.totalorder %s2267_s18, %s2260_s24 }
  0x6c   : > { %p2264_p5 = pneg %p2263_p3  ;;  %p2270_p8 = por %p2269_p4, %p2268_p2 }
  0x6e   : > { %p2271_p11 = pnand %p2270_p8, %p2264_p5 }
  0x70   : > { %2274 = shalt.err (!%p2271_p11)
}
  0x71   : > { %2086 = dma.hbm_to_vmem [thread:$0]  (!%p2563_p9), %s2615_s23, 128, %s308_s21, %s297_s3  }
  0x72   : > { %s341_s30 = scalar_lea.hbm %s2864_s2, %s2557_s14  ;;  %s336_s7 = scalar_lea.vmem [#allocation7], %s2561_s20 }
  0x73   : > { %s343_s27 = sshll.u32 %s336_s7, 4  ;;  %s2275_s22 = scalar_lea.hbm %s341_s30, 128  ;;  %s344_s27 = int_to_ptr.vmem [resolvable:$true] %s343_s27 }
  0x74   : > { %p2276_p13 = scmp.ne.s32.totalorder %s341_s30, %s2275_s22  ;;  %s2280_s16 = scalar_lea.hbm %s2864_s2, 256 }
  0x75   : > { %p2281_p12 = scmp.lt.s32.totalorder %s341_s30, %s2864_s2  ;;  %p2282_p7 = scmp.lt.s32.totalorder %s2280_s16, %s2275_s22 }
  0x76   : > { %p2278_p1 = pnand %p2276_p13, %p2581_p10 }
  0x77   : > { %p2283_p0 = por %p2282_p7, %p2281_p12 }
  0x78   : > { %p2279_p6 = pneg %p2278_p1 }
  0x7a   : > { %p2284_p3 = pnand %p2283_p0, %p2279_p6 }
  0x7c   : > { %2287 = shalt.err (!%p2284_p3)
}
  0x7d   : > { %s2288_s14 = scalar_lea.vmem %s344_s27, 128  ;;  %s2413_s20 = smov [#allocation7]  }
  0x7e   : > { %p2289_p5 = scmp.ne.s32.totalorder %s344_s27, %s2288_s14  ;;  %s2293_s23 = sshll.u32 %s2413_s20, 4  ;;  %s2294_s23 = int_to_ptr.vmem [resolvable:$false] %s2293_s23 }
  0x7f   : > { %s2295_s21 = scalar_lea.vmem %s2294_s23, 256  ;;  %p2296_p8 = scmp.lt.s32.totalorder %s344_s27, %s2294_s23 }
  0x80   : > { %p2291_p2 = pnand %p2289_p5, %p2581_p10  ;;  %p2297_p11 = scmp.lt.s32.totalorder %s2295_s21, %s2288_s14 }
  0x82   : > { %p2292_p4 = pneg %p2291_p2  ;;  %p2298_p13 = por %p2297_p11, %p2296_p8 }
  0x84   : > { %p2299_p1 = pnand %p2298_p13, %p2292_p4 }
  0x86   : > { %2302 = shalt.err (!%p2299_p1)
}
  0x87   : > { %2092 = dma.hbm_to_vmem [thread:$0]  (!%p2563_p9), %s341_s30, 128, %s344_s27, %s2575_s10  }
  0x88   : > { %p2909_p6 = scmp.ne.s32.totalorder %s2895_s13, 0 }
  0x89   : > { %s2657_s0 = sand.u32 (!%p2909_p6), 1, %s2397_s28   ;;  %p2910_p10 = scmp.ne.s32.totalorder (!%p2909_p6), %s2892_s11, 0 }
  0x8a   : > { %352 = sbr.rel (%p2909_p6) target bundleno = 1816 (0x718), region = 48  ;;  %s2660_s25 = sshll.u32 (!%p2909_p6), %s2657_s0, 3 }
  0x8b   : > { %s355_s3 = scalar_lea.sflag (!%p2909_p6), [#allocation3], %s2657_s0  ;;  %s358_s17 = scalar_lea.vmem (!%p2909_p6), [#allocation2], %s2660_s25 }
  0x8f   : > { %2372 = dma.done.wait (%p2910_p10), %s355_s3, 128  }
  0x90   : > { %2374 = vsyncadd (%p2910_p10), %s355_s3, 4294967168  ;;  %s363_s13 = sand.u32 1, %s2491_s9   ;;  %s367_s15 = scalar_lea.vmem [#allocation5], %s2660_s25 }
  0x91   : > { %s364_s10 = scalar_lea.sflag [#allocation6], %s363_s13 }
  0x92   : > { %2376 = dma.done.wait (%p2910_p10), %s364_s10, 256  }
  0x93   : > { %2378 = vsyncadd (%p2910_p10), %s364_s10, 4294967040  ;;  %s376_s12 = scalar_lea.vmem [#allocation7], %s2660_s25  ;;  %p2911_p9 = scmp.eq.s32.totalorder %s2491_s9, 0 }
  0x95   : > { %2380 = dma.done.wait (%p2911_p9), [#allocation9], 1024   ;;  %p2912_p12 = pmov %p2911_p9 }
  0x96   : > { %v2414_v0 = vmov 0.0   ;;  %vm2415_vm0 = vmmov 0   ;;  %v436_v1 = vld [vmem:[#allocation8 + $0x8] sm:$0xff]  ;;  %v435_v2 = vld [vmem:[#allocation8] sm:$0xff]  ;;  %v432_v3 = vld [vmem:[%s358_s17] sm:$0xff]  ;;  %vm462_vm1 = vcmask 130048  }
  0x97   : > { %2382 = vsyncadd (%p2912_p12), [#allocation9], 4294966272  ;;  %1990 = vmatprep.subr.mxu0 %v2414_v0  ;;  %1994 = vmatprep.mubr.msk.f32.mxu0 %vm2415_vm0, %v2414_v0  ;;  %v440_v4 = vld [vmem:[#allocation8 + $0x28] sm:$0xff]  ;;  %v439_v5 = vld [vmem:[#allocation8 + $0x20] sm:$0xff]  ;;  %vm707_vm2 = vcmask 31744   ;;  %s2416_s22 = smov 120  }
  0x98   : > { %1997 = vmatprep.subr.mxu1 %v2414_v0  ;;  %2001 = vmatprep.mubr.msk.f32.mxu1 %vm2415_vm0, %v2414_v0  ;;  %v434_v6 = vld [vmem:[%s376_s12] sm:$0xff]  ;;  %v433_v9 = vld [vmem:[%s367_s15] sm:$0xff]  ;;  %s2417_s24 = smov 124   ;;  %s2418_s19 = smov 116   ;;  %vm1140_vm3 = vcmask 64512   ;;  %vm1631_vm4 = vcmask 97280  }
  0x99   : > { %1991 = vmatpush3.msra.mxu0 %v436_v1  ;;  %v438_v7 = vld [vmem:[#allocation8 + $0x18] sm:$0xff]  ;;  %v437_v8 = vld [vmem:[#allocation8 + $0x10] sm:$0xff]  ;;  %s1933_s14 = sshll.u32 %s2657_s0, 5  ;;  %s2419_s23 = smov 4  }
  0x9a   : > { %1992 = vmatprep.subr.mxu0 %v2414_v0  ;;  %1998 = vmatpush3.msra.mxu1 %v438_v7  ;;  %v1934_v10 = vld [vmem:[%s2866_s4] ss:$0 sm:$0xff]  ;;  %v1936_v14 = vld [vmem:[%s2866_s4 + $0x2] ss:$0 sm:$0xff]  ;;  %v1935_v24 = vld [vmem:[%s2866_s4 + $0x1] ss:$0 sm:$0xff] }
  0x9b   : > { %1993 = vmatpush3.msra.mxu0 %v435_v2  ;;  %1999 = vmatprep.subr.mxu1 %v2414_v0  ;;  %s2757_s20 = scalar_lea.vmem [#allocation12], %s1933_s14  ;;  %s2420_s21 = smov 8  }
  0x9c   : > { %1995 = vmatmul.mubr.msk.f32.vlgmr.msra.gmra.mxu0 %vm462_vm1, %v432_v3  ;;  %2004 = vmatprep.subr.mxu0 %v2414_v0  ;;  %s2421_s3 = smov 12   ;;  %s1748_s17 = sshll.u32 %s2757_s20, 4  ;;  %s2784_s17 = int_to_ptr.vmem [resolvable:$true] %s1748_s17 }
  0x9d   : > { %2005 = vmatpush3.msra.mxu0 %v440_v4  ;;  %2008 = vmatprep.mubr.msk.f32.mxu0 %vm2415_vm0, %v2414_v0  ;;  %s1961_s13 = sshll.u32 %s2491_s9, 9  ;;  %s1722_s11 = scalar_lea.sflag [#allocation13], %s2657_s0 }
  0x9e   : > { %2006 = vmatprep.subr.mxu0 %v2414_v0  ;;  %2000 = vmatpush3.msra.mxu1 %v437_v8  ;;  %s2790_s12 = scalar_lea.hbm %s2870_s8, %s1961_s13  ;;  %s2303_s30 = scalar_lea.vmem %s2784_s17, 512 }
  0x9f   : > { %2007 = vmatpush3.msra.mxu0 %v439_v5  ;;  %2011 = vmatprep.subr.mxu1 %v2414_v0  ;;  %p2304_p7 = scmp.ne.s32.totalorder %s2784_s17, %s2303_s30  ;;  %p2913_p0 = scmp.ne.s32.totalorder %s2900_s26, 0 }
  0xa0   : > { %2009 = vmatmul.mubr.msk.f32.vlgmr.msra.gmra.mxu0 %vm462_vm1, %v434_v6  ;;  %2016 = vmatprep.subr.mxu0 %v2414_v0  ;;  %s2422_s7 = smov [#allocation12]  }
  0xa1   : > { %2018 = vmatprep.mubr.msk.f32.mxu0 %vm2415_vm0, %v2414_v0  ;;  %2002 = vmatmul.mubr.msk.f32.vlgmr.msra.gmra.mxu1 %vm462_vm1, %v433_v9  ;;  %p2305_p3 = pnand %p2304_p7, %p2913_p0  ;;  %s2307_s27 = sshll.u32 %s2422_s7, 4  ;;  %s2308_s27 = int_to_ptr.vmem [resolvable:$false] %s2307_s27 }
  0xa2   : > { %2013 = vmatprep.mubr.msk.f32.mxu1 %vm2415_vm0, %v2414_v0  ;;  %p2310_p2 = scmp.lt.s32.totalorder %s2784_s17, %s2308_s27 }
  0xa3   : > { %p2306_p5 = pneg %p2305_p3 }
 0x15c   : > { %v532_v11 = vpop.f32.mrf.mxu0 }
 0x15d   : > { %v533_v12 = vadd.f32 %v1934_v10, %v532_v11 }
 0x15e   : > { %v1996_v13 = vpop.f32.mrf.mxu0 }
 0x15f   : > { %693 = vrot.lane.b32.xlu1 %v533_v12, %s2416_s22  ;;  %691 = vrot.lane.b32.xlu0 %v533_v12, %s2417_s24 }
 0x160   : > { %v678_v15 = vpop.f32.mrf.mxu0  ;;  %2012 = vmatpush3.xpose.msk.msra.mxu1 %vm707_vm2, %v533_v12 }
 0x161   : > { %v679_v16 = vadd.f32 %v1936_v14, %v678_v15  ;;  %2021 = vmatprep.subr.mxu1 %v2414_v0  ;;  %v605_v19 = vpop.f32.mrf.mxu1 }
 0x162   : > { %v2010_v17 = vpop.f32.mrf.mxu0  ;;  %v2730_v26 = vadd.f32 %v1935_v24, %v605_v19 }
 0x163   : > { %v682_v18 = vmul.f32 0.5, %v679_v16  ;;  %695 = vrot.lane.b32.xlu1 %v533_v12, %s2418_s19  ;;  %v2003_v20 = vpop.f32.mrf.mxu1 }
 0x165   : > { %684 = vrot.lane.b32.xlu0 %v682_v18, %s2417_s24  ;;  %2014 = vmatmul.mubr.msk.f32.vlgmr.msra.gmra.mxu1 %vm707_vm2, %v682_v18 }
 0x166   : > { %2023 = vmatprep.mubr.msk.f32.mxu1 %vm2415_vm0, %v2414_v0 }
 0x167   : > { %688 = vrot.lane.b32.xlu1 %v682_v18, %s2418_s19 }
 0x169   : > { %686 = vrot.lane.b32.xlu0 %v682_v18, %s2416_s22 }
 0x1d1   : > { %v694_v21 = vpop.permute.xlu1 %693  ;;  %v692_v22 = vpop.permute.xlu0 %691 }
 0x1d2   : > { %2017 = vmatpush3.xpose.msk.msra.mxu0 %vm707_vm2, %v692_v22  ;;  %2022 = vmatpush3.xpose.msk.msra.mxu1 %vm707_vm2, %v694_v21 }
 0x1d3   : > { %2026 = vmatprep.subr.mxu0 %v2414_v0  ;;  %2031 = vmatprep.subr.mxu1 %v2414_v0 }
 0x1d5   : > { %v696_v23 = vpop.permute.xlu1 %695 }
 0x1d7   : > { %v685_v25 = vpop.permute.xlu0 %684 }
 0x1d8   : > { %2019 = vmatmul.mubr.msk.f32.vlgmr.msra.gmra.mxu0 %vm707_vm2, %v685_v25 }
 0x1d9   : > { %2027 = vmatpush3.xpose.msk.msra.mxu0 %vm707_vm2, %v696_v23  ;;  %2028 = vmatprep.mubr.msk.f32.mxu0 %vm2415_vm0, %v2414_v0  ;;  %v689_v27 = vpop.permute.xlu1 %688 }
 0x1da   : > { %2036 = vmatprep.subr.mxu0 %v2414_v0 }
 0x1db   : > { %v687_v28 = vpop.permute.xlu0 %686 }
 0x1dc   : > { %2024 = vmatmul.mubr.msk.f32.vlgmr.msra.gmra.mxu1 %vm707_vm2, %v687_v28  ;;  %2029 = vmatmul.mubr.msk.f32.vlgmr.msra.gmra.mxu0 %vm707_vm2, %v689_v27 }
 0x1dd   : > { %2032 = vmatpush3.msra.mxu1 %v2730_v26  ;;  %2033 = vmatprep.mubr.msk.f32.mxu1 %vm2415_vm0, %v2414_v0 }
 0x1de   : > { %2041 = vmatprep.subr.mxu1 %v2414_v0  ;;  %2038 = vmatprep.mubr.msk.f32.mxu0 %vm2415_vm0, %v2414_v0 }
 0x225   : > { %v778_v29 = vpop.f32.mrf.mxu1 }
 0x226   : > { %1004 = vxpose.xlu0.b32.start.end [1/1] (short) (narrow) %v778_v29, 8 }
 0x227   : > { %v2015_v30 = vpop.f32.mrf.mxu1 }
 0x298   : > { %v852_v31 = vpop.f32.mrf.mxu0 }
 0x299   : > { %1036 = vxpose.xlu1.b32.start.end [1/1] (short) (narrow) %v852_v31, 8 }
 0x29a   : > { %v2020_v32 = vpop.f32.mrf.mxu0 }
 0x29c   : > { %v926_v33 = vpop.f32.mrf.mxu1  ;;  %v1000_v34 = vpop.f32.mrf.mxu0 }
 0x29e   : > { %v2025_v35 = vpop.f32.mrf.mxu1  ;;  %v2030_v36 = vpop.f32.mrf.mxu0 }
 0x2a2   : > { %v1020_v37 = vpop.trf.xlu0 }
 0x2a3   : > { %v1132_v38 = vadd.f32 %v1020_v37, %v778_v29 }
 0x2a5   : > { %v1136_v39 = vmul.f32 0.5, %v1132_v38 }
 0x2a7   : > { %v1141_v40 = vsel %vm1140_vm3, %v1136_v39, -inf }
 0x2a8   : > { %1142 = vmax.xlane.f32.xlu0 %v1141_v40 }
 0x2d5   : > { %1068 = vxpose.xlu0.b32.start.end [1/1] (short) (narrow) %v926_v33, 8 }
 0x2d9   : > { %1100 = vxpose.xlu0.b32.start.end [1/1] (short) (narrow) %v1000_v34, 8 }
 0x315   : > { %v1052_v41 = vpop.trf.xlu1 }
 0x316   : > { %v1133_v42 = vadd.f32 %v1052_v41, %v852_v31  ;;  %v1634_v41 = vld [vmem:[#allocation10 + $0x8] sm:$0xff] }
 0x318   : > { %v1137_v43 = vmul.f32 0.5, %v1133_v42  ;;  %v1633_v42 = vld [vmem:[#allocation10] sm:$0xff] }
 0x31a   : > { %v1144_v44 = vsel %vm1140_vm3, %v1137_v43, -inf }
 0x31b   : > { %1145 = vmax.xlane.f32.xlu1 %v1144_v44 }
 0x331   : > { %v1143_v45 = vpop.xlane.xlu0 %1142 }
 0x332   : > { %v1153_v46 = vsub.f32 %v1136_v39, %v1143_v45 }
 0x334   : > { %v1157_v47 = vmul.f32 1.442695, %v1153_v46 }
 0x336   : > { %2151 = vpow2.f32 %v1157_v47 }
 0x343   : > { %v2152_v54 = vpop.eup %2151 }
 0x344   : > { %v1165_v56 = vsel %vm1140_vm3, %v2152_v54, 0.0 }
 0x351   : > { %v1084_v48 = vpop.trf.xlu0 }
 0x352   : > { %v1134_v49 = vadd.f32 %v1084_v48, %v926_v33 }
 0x354   : > { %v1138_v50 = vmul.f32 0.5, %v1134_v49 }
 0x355   : > { %v1116_v51 = vpop.trf.xlu0 }
 0x356   : > { %v1135_v52 = vadd.f32 %v1116_v51, %v1000_v34  ;;  %v1147_v53 = vsel %vm1140_vm3, %v1138_v50, -inf }
 0x357   : > { %1148 = vmax.xlane.f32.xlu1 %v1147_v53 }
 0x358   : > { %v1139_v55 = vmul.f32 0.5, %v1135_v52 }
 0x35a   : > { %v1150_v57 = vsel %vm1140_vm3, %v1139_v55, -inf }
 0x35b   : > { %1166 = vadd.xlane.f32.xlu1 %v1165_v56  ;;  %1151 = vmax.xlane.f32.xlu0 %v1150_v57 }
 0x3a4   : > { %v1146_v58 = vpop.xlane.xlu1 %1145 }
 0x3a5   : > { %v1154_v59 = vsub.f32 %v1137_v43, %v1146_v58 }
 0x3a7   : > { %v1159_v60 = vmul.f32 1.442695, %v1154_v59 }
 0x3a9   : > { %2153 = vpow2.f32 %v1159_v60 }
 0x3b6   : > { %v2154_v61 = vpop.eup %2153 }
 0x3b7   : > { %v1168_v62 = vsel %vm1140_vm3, %v2154_v61, 0.0 }
 0x3b8   : > { %1169 = vadd.xlane.f32.xlu0 %v1168_v62 }
 0x3e0   : > { %v1149_v63 = vpop.xlane.xlu1 %1148 }
 0x3e1   : > { %v1155_v1 = vsub.f32 %v1138_v50, %v1149_v63 }
 0x3e3   : > { %v1161_v2 = vmul.f32 1.442695, %v1155_v1 }
 0x3e4   : > { %v1152_v3 = vpop.xlane.xlu0 %1151  ;;  %v1167_v10 = vpop.xlane.xlu1 %1166 }
 0x3e5   : > { %2155 = vpow2.f32 %v1161_v2  ;;  %v1156_v4 = vsub.f32 %v1139_v55, %v1152_v3 }
 0x3e7   : > { %v1163_v5 = vmul.f32 1.442695, %v1156_v4 }
 0x3e9   : > { %2157 = vpow2.f32 %v1163_v5 }
 0x3ea   : > { %2159 = vrcp.f32 %v1167_v10 }
 0x3f2   : > { %v2156_v6 = vpop.eup %2155 }
 0x3f3   : > { %v1171_v7 = vsel %vm1140_vm3, %v2156_v6, 0.0 }
 0x3f4   : > { %1172 = vadd.xlane.f32.xlu1 %v1171_v7 }
 0x3f6   : > { %v2158_v8 = vpop.eup %2157 }
 0x3f7   : > { %v1174_v9 = vsel %vm1140_vm3, %v2158_v8, 0.0  ;;  %v2160_v11 = vpop.eup %2159 }
 0x3f8   : > { %1175 = vadd.xlane.f32.xlu0 %v1174_v9  ;;  %v1181_v12 = vmul.f32 %v2160_v11, %v2152_v54 }
 0x405   : > { %698 = vrot.lane.b32.xlu1 %v2730_v26, %s2417_s24 }
 0x409   : > { %704 = vrot.lane.b32.xlu1 %v2730_v26, %s2418_s19 }
 0x40e   : > { %701 = vrot.lane.b32.xlu0 %v2730_v26, %s2416_s22  ;;  %s2309_s22 = scalar_lea.vmem %s2308_s27, 1024 }
 0x40f   : > { %p2311_p4 = scmp.lt.s32.totalorder %s2309_s22, %s2303_s30 }
 0x411   : > { %p2312_p8 = por %p2311_p4, %p2310_p2 }
 0x413   : > { %p2313_p11 = pnand %p2312_p8, %p2306_p5 }
 0x432   : > { %1185 = vxpose.xlu1.b32.start.end [1/1] (short) (narrow) %v1181_v12, 8 }
 0x441   : > { %v1170_v13 = vpop.xlane.xlu0 %1169 }
 0x442   : > { %2161 = vrcp.f32 %v1170_v13 }
 0x44f   : > { %v2162_v14 = vpop.eup %2161 }
 0x450   : > { %v1182_v15 = vmul.f32 %v2162_v14, %v2154_v61 }
 0x452   : > { %1217 = vxpose.xlu0.b32.start.end [1/1] (short) (narrow) %v1182_v15, 8 }
 0x47d   : > { %v1173_v16 = vpop.xlane.xlu1 %1172 }
 0x47e   : > { %2163 = vrcp.f32 %v1173_v16 }
 0x481   : > { %v699_v17 = vpop.permute.xlu1 %698  ;;  %v1176_v18 = vpop.xlane.xlu0 %1175 }
 0x482   : > { %2165 = vrcp.f32 %v1176_v18  ;;  %2037 = vmatpush3.msra.mxu0 %v699_v17 }
 0x483   : > { %2046 = vmatprep.subr.mxu0 %v2414_v0 }
 0x485   : > { %v705_v23 = vpop.permute.xlu1 %704  ;;  %v702_v27 = vpop.permute.xlu0 %701 }
 0x48b   : > { %v2164_v19 = vpop.eup %2163 }
 0x48c   : > { %v1183_v20 = vmul.f32 %v2164_v19, %v2156_v6 }
 0x48e   : > { %1249 = vxpose.xlu0.b32.start.end [1/1] (short) (narrow) %v1183_v20, 8 }
 0x48f   : > { %v2166_v21 = vpop.eup %2165 }
 0x490   : > { %v1184_v22 = vmul.f32 %v2166_v21, %v2158_v8 }
 0x492   : > { %1281 = vxpose.xlu0.b32.start.end [1/1] (short) (narrow) %v1184_v22, 8 }
 0x4ae   : > { %v1201_v24 = vpop.trf.xlu1 }
 0x4af   : > { %v1313_v25 = vadd.f32 %v1201_v24, %v1181_v12 }
 0x4b1   : > { %v1317_v26 = vmul.f32 0.5, %v1313_v25 }
 0x4b3   : > { %1321 = vst.msk [vmem:[%s2757_s20] sm:$0xff] %vm1140_vm3, %v1317_v26  ;;  %2034 = vmatmul.mubr.msk.f32.vlgmr.msra.gmra.mxu1 %vm1140_vm3, %v1317_v26 }
 0x4b4   : > { %2042 = vmatpush3.msra.mxu1 %v702_v27  ;;  %2043 = vmatprep.mubr.msk.f32.mxu1 %vm2415_vm0, %v2414_v0 }
 0x4b5   : > { %2051 = vmatprep.subr.mxu1 %v2414_v0 }
 0x4ce   : > { %v1233_v28 = vpop.trf.xlu0 }
 0x4cf   : > { %v1314_v29 = vadd.f32 %v1233_v28, %v1182_v15 }
 0x4d1   : > { %v1318_v30 = vmul.f32 0.5, %v1314_v29 }
 0x4d3   : > { %1322 = vst.msk [vmem:[%s2757_s20 + $0x8] sm:$0xff] %vm1140_vm3, %v1318_v30  ;;  %2039 = vmatmul.mubr.msk.f32.vlgmr.msra.gmra.mxu0 %vm1140_vm3, %v1318_v30 }
 0x4d4   : > { %2047 = vmatpush3.msra.mxu0 %v705_v23  ;;  %2048 = vmatprep.mubr.msk.f32.mxu0 %vm2415_vm0, %v2414_v0 }
 0x50a   : > { %v1265_v31 = vpop.trf.xlu0 }
 0x50b   : > { %v1315_v32 = vadd.f32 %v1265_v31, %v1183_v20 }
 0x50d   : > { %v1319_v33 = vmul.f32 0.5, %v1315_v32 }
 0x50e   : > { %v1297_v34 = vpop.trf.xlu0 }
 0x50f   : > { %1323 = vst.msk [vmem:[%s2757_s20 + $0x10] sm:$0xff] %vm1140_vm3, %v1319_v33  ;;  %v1316_v35 = vadd.f32 %v1297_v34, %v1184_v22  ;;  %2044 = vmatmul.mubr.msk.f32.vlgmr.msra.gmra.mxu1 %vm1140_vm3, %v1319_v33 }
 0x510   : > { %2055 = vmatprep.mubr.msk.f32.mxu1 %vm2415_vm0, %v2414_v0  ;;  %2052 = vmatpush3.msra.mxu1 %v1634_v41 }
 0x511   : > { %v1320_v36 = vmul.f32 0.5, %v1316_v35  ;;  %2053 = vmatprep.subr.mxu1 %v2414_v0 }
 0x512   : > { %2054 = vmatpush3.msra.mxu1 %v1633_v42 }
 0x513   : > { %1324 = vst.msk [vmem:[%s2757_s20 + $0x18] sm:$0xff] %vm1140_vm3, %v1320_v36  ;;  %2049 = vmatmul.mubr.msk.f32.vlgmr.msra.gmra.mxu0 %vm1140_vm3, %v1320_v36 }
 0x573   : > { %v1394_v37 = vpop.f32.mrf.mxu1 }
 0x575   : > { %v2035_v38 = vpop.f32.mrf.mxu1 }
 0x593   : > { %v1467_v39 = vpop.f32.mrf.mxu0 }
 0x594   : > { %1618 = vrot.lane.b32.xlu1 %v1467_v39, %s2419_s23 }
 0x595   : > { %v2040_v40 = vpop.f32.mrf.mxu0 }
 0x5cf   : > { %v1540_v43 = vpop.f32.mrf.mxu1 }
 0x5d0   : > { %1622 = vrot.lane.b32.xlu0 %v1540_v43, %s2420_s21 }
 0x5d1   : > { %v2045_v44 = vpop.f32.mrf.mxu1 }
 0x5d3   : > { %v1613_v45 = vpop.f32.mrf.mxu0 }
 0x5d4   : > { %1626 = vrot.lane.b32.xlu1 %v1613_v45, %s2421_s3 }
 0x5d5   : > { %v2050_v46 = vpop.f32.mrf.mxu0 }
 0x606   : > { %v1619_v47 = vpop.permute.xlu1 %1618 }
 0x607   : > { %v1629_v0 = vsel %vm707_vm2, %v1394_v37, %v1619_v47 }
 0x642   : > { %v1623_v48 = vpop.permute.xlu0 %1622 }
 0x643   : > { %v1630_v49 = vsel %vm1140_vm3, %v1629_v0, %v1623_v48 }
 0x646   : > { %v1627_v50 = vpop.permute.xlu1 %1626 }
 0x647   : > { %v1632_v51 = vsel %vm1631_vm4, %v1630_v49, %v1627_v50 }
 0x648   : > { %2056 = vmatmul.mubr.msk.f32.vlgmr.msra.gmra.mxu1 %vm462_vm1, %v1632_v51 }
 0x649   : > { %2316 = shalt.err (!%p2313_p11)
}
 0x64a   : > { %s2317_s24 = scalar_lea.hbm %s2790_s12, 512  ;;  %s2321_s18 = scalar_lea.hbm %s2870_s8, 1024 }
 0x64b   : > { %p2318_p13 = scmp.ne.s32.totalorder %s2790_s12, %s2317_s24  ;;  %p2322_p10 = scmp.lt.s32.totalorder %s2790_s12, %s2870_s8 }
 0x64c   : > { %p2323_p9 = scmp.lt.s32.totalorder %s2321_s18, %s2317_s24 }
 0x64d   : > { %p2319_p1 = pnand %p2318_p13, %p2913_p0 }
 0x64e   : > { %p2324_p12 = por %p2323_p9, %p2322_p10 }
 0x64f   : > { %p2320_p6 = pneg %p2319_p1 }
 0x651   : > { %p2325_p7 = pnand %p2324_p12, %p2320_p6 }
 0x653   : > { %2328 = shalt.err (!%p2325_p7)
}
 0x654   : > { %s2423_s23 = smov 128   ;;  %v1952_v52 = vld [vmem:[%s2868_s6] ss:$0 sm:$0xff]  ;;  %s1956_s10 = sshll.u32 %s2491_s9, 7 }
 0x655   : > { %2073 = dma.vmem_to_hbm [thread:$0]  (%p2913_p0), %s2784_s17, 512, %s2790_s12, %s1722_s11, %s2423_s23, %s2423_s23, %s2420_s21  }
 0x656   : > { %s424_s15 = scalar_lea.vmem [#allocation11], %s2660_s25  ;;  %s2914_s22 = sld [smem:[#allocation26_spill]] }
 0x657   : > { %s1735_s30 = sshll.u32 %s424_s15, 4  ;;  %s1717_s19 = scalar_lea.sflag [#allocation4], %s2657_s0  ;;  %s1736_s30 = int_to_ptr.vmem [resolvable:$true] %s1735_s30 }
 0x658   : > { %s2329_s21 = scalar_lea.vmem %s1736_s30, 128  ;;  %s2424_s9 = smov [#allocation11]  }
 0x659   : > { %p2330_p3 = scmp.ne.s32.totalorder %s1736_s30, %s2329_s21  ;;  %s2333_s25 = sshll.u32 %s2424_s9, 4  ;;  %s2334_s25 = int_to_ptr.vmem [resolvable:$false] %s2333_s25 }
 0x65a   : > { %s2335_s17 = scalar_lea.vmem %s2334_s25, 256  ;;  %p2336_p4 = scmp.lt.s32.totalorder %s1736_s30, %s2334_s25 }
 0x65b   : > { %p2331_p5 = pnand %p2330_p3, %p2913_p0  ;;  %p2337_p8 = scmp.lt.s32.totalorder %s2335_s17, %s2329_s21 }
 0x65c   : > { %s2824_s24 = scalar_lea.hbm %s2914_s22, %s1956_s10 }
 0x65d   : > { %p2332_p2 = pneg %p2331_p5  ;;  %p2338_p11 = por %p2337_p8, %p2336_p4 }
 0x65f   : > { %p2339_p13 = pnand %p2338_p11, %p2332_p2 }
 0x708   : > { %v1711_v53 = vpop.f32.mrf.mxu1 }
 0x709   : > { %v1712_v54 = vadd.f32 %v1952_v52, %v1711_v53 }
 0x70a   : > { %v2057_v55 = vpop.f32.mrf.mxu1 }
 0x70b   : > { %1715 = vst.msk [vmem:[%s424_s15] sm:$0xff] %vm462_vm1, %v1712_v54 }
 0x70c   : > { %2342 = shalt.err (!%p2339_p13)
}
 0x70d   : > { %s2343_s12 = scalar_lea.hbm %s2824_s24, 128  ;;  %s2347_s16 = scalar_lea.hbm %s2914_s22, 256 }
 0x70e   : > { %p2344_p1 = scmp.ne.s32.totalorder %s2824_s24, %s2343_s12  ;;  %p2348_p9 = scmp.lt.s32.totalorder %s2824_s24, %s2914_s22 }
 0x70f   : > { %p2349_p12 = scmp.lt.s32.totalorder %s2347_s16, %s2343_s12 }
 0x710   : > { %p2345_p6 = pnand %p2344_p1, %p2913_p0 }
 0x711   : > { %p2350_p7 = por %p2349_p12, %p2348_p9 }
 0x712   : > { %p2346_p10 = pneg %p2345_p6 }
 0x714   : > { %p2351_p3 = pnand %p2350_p7, %p2346_p10 }
 0x716   : > { %2354 = shalt.err (!%p2351_p3)
}
 0x717   : > { %2072 = dma.vmem_to_hbm [thread:$0]  (%p2913_p0), %s1736_s30, 128, %s2824_s24, %s1717_s19  }
 0x718 PF: > { %s2915_s20 = sld [smem:[#allocation19_spill]] }
 0x719   : > { %s2916_s23 = sld [smem:[#allocation21_spill]] }
 0x71a   : > { %s2917_s3 = sld [smem:[#allocation20_spill]] }
 0x71e   : > { %s1763_s13 = sand.u32 1, %s2915_s20  }
 0x71f   : > { %p2918_p5 = scmp.ne.s32.totalorder %s2916_s23, 0  ;;  %s1764_s10 = scalar_lea.sflag [#allocation4], %s1763_s13 }
 0x720   : > { %p2919_p2 = scmp.ge.s32.totalorder %s2917_s3, 2 }
 0x722   : > { %p2094_p4 = pnand %p2919_p2, %p2918_p5 }
 0x724   : > { %p2095_p8 = pneg %p2094_p4 }
 0x726   : > { %2384 = dma.done.wait (%p2095_p8), %s1764_s10, 128  }
 0x727   : > { %2386 = vsyncadd (%p2095_p8), %s1764_s10, 4294967168  ;;  %s1773_s15 = scalar_lea.sflag [#allocation13], %s1763_s13 }
 0x728   : > { %2388 = dma.done.wait (%p2095_p8), %s1773_s15, 512  }
 0x729   : > { %2390 = vsyncadd (%p2095_p8), %s1773_s15, 4294966784  ;;  %s2920_s30 = sld [smem:[#allocation22_spill]]  ;;  %s2922_s27 = smov %s2397_s28 }
 0x72a   : > { %s2921_s26 = sld [smem:[#allocation23_spill]]  ;;  %s2923_s28 = smov %s2401_s29 }
 0x72f   : > { %p29_p0 = scmp.ge.s32.totalorder %s2920_s30, 4  }
 0x730   : > { %s2924_s29 = smov %s2921_s26 }
 0x731   :  { %31 = sbr.rel (!%p29_p0) target bundleno = 14 (0xe), region = 142 }
 0x736   :  { %1778 = vsyncpa [#allocation3], 1 }
 0x737   :  { %1780 = vsyncpa [#allocation3 + $0x1], 1 }
 0x738   :  { %1781 = vsyncpa [#allocation6], 1 }
 0x739   :  { %1783 = vsyncpa [#allocation6 + $0x1], 1 }
 0x73a   :  { %1784 = vsyncpa [#allocation9], 1 }
 0x73b   :  { %1785 = vsyncpa [#allocation4], 1 }
 0x73c   :  { %1787 = vsyncpa [#allocation4 + $0x1], 1 }
 0x73d   :  { %1788 = vsyncpa [#allocation13], 1 }
 0x73e   :  { %1790 = vsyncpa [#allocation13 + $0x1], 1 }

</bundles_post_ra>
